<compile_context>
chip_gen: v6e
topology: v6e:2x2x1
jax: 0.10.0
libtpu: 0.0.40
codegen_flags: <defaults>
</compile_context>

<pallas_src>
import functools
import math

import jax
import jax.numpy as jnp
from jax import lax
from jax.experimental import pallas as pl
from jax.experimental.pallas import tpu as pltpu

_LANE = 128
_IN_BLOCK_BYTES = 8 * 1024 * 1024    # target input bytes per grid step
_OUT_BLOCK_BYTES = 8 * 1024 * 1024   # cap on (sublane-padded) output block


def _ceil_to(n: int, m: int) -> int:
    return ((n + m - 1) // m) * m


def _floor_to(n: int, m: int) -> int:
    return (n // m) * m


def _single_step_kernel(x_ref, o_ref, *, acc_dtype):
    # x_ref: (tb, C, t_hw)   o_ref: (tb, 1, t_hw)
    # Whole channel extent in one block -> no scratch, no init/finalize.
    o_ref[...] = jnp.sum(
        x_ref[...], axis=1, keepdims=True, dtype=acc_dtype
    ).astype(o_ref.dtype)


def _multi_step_kernel(x_ref, o_ref, acc_ref, *, acc_dtype, tc, c_total, mask_c):
    # x_ref: (tb, tc, t_hw)  o_ref/acc_ref: (tb, 1, t_hw); k = reduction axis.
    k = pl.program_id(2)

    @pl.when(k == 0)
    def _():
        acc_ref[...] = jnp.zeros_like(acc_ref)

    xb = x_ref[...]
    if mask_c:
        # Partial channel tile: out-of-range channels hold unspecified data
        # and would corrupt the sum -> mask them (cheap VPU filler).
        ch = k * tc + lax.broadcasted_iota(jnp.int32, xb.shape, 1)
        xb = jnp.where(ch < c_total, xb, jnp.zeros_like(xb))

    acc_ref[...] += jnp.sum(xb, axis=1, keepdims=True, dtype=acc_dtype)

    @pl.when(k == pl.num_programs(2) - 1)
    def _():
        o_ref[...] = acc_ref[...].astype(o_ref.dtype)


def sum_dim1(x: jax.Array) -> jax.Array:
    """Equivalent of torch.sum(x, dim=1) for a tensor of rank >= 2."""
    if x.ndim < 2:
        raise ValueError("sum_dim1 requires rank >= 2")
    B, C = int(x.shape[0]), int(x.shape[1])
    spatial = tuple(int(d) for d in x.shape[2:])
    HW = int(math.prod(spatial)) if spatial else 1

    itemsize = x.dtype.itemsize
    sub = {1: 32, 2: 16, 4: 8}.get(itemsize, 8)          # native sublane tiling
    is_int = jnp.issubdtype(x.dtype, jnp.integer) or x.dtype == jnp.bool_
    acc_dtype = jnp.int32 if is_int else jnp.float32

    # Free reshape (row-major) — never write a padded copy of x to HBM.
    x3 = x.reshape(B, C, HW)

    # ---------------- tile sizing (byte-based) ----------------
    # Channel tile: keep the full C whenever it fits the byte budget at the
    # minimum lane width (the common case); otherwise split C (sub-aligned).
    if C * _LANE * itemsize <= _IN_BLOCK_BYTES:
        tc = C
    else:
        tc = max(sub, _floor_to(_IN_BLOCK_BYTES // (_LANE * itemsize), sub))

    # Spatial (lane) tile: as large as the input byte budget and the
    # (worst-case sublane-padded) output block budget allow.
    max_thw_in = max(_LANE, _IN_BLOCK_BYTES // max(1, tc * itemsize))
    max_thw_out = max(_LANE, _OUT_BLOCK_BYTES // (sub * itemsize))
    thw_budget = min(max_thw_in, max_thw_out)
    if HW <= thw_budget:
        t_hw = HW                                   # full dim (no 128 alignment needed)
    else:
        t_hw = max(_LANE, _floor_to(thw_budget, _LANE))   # 128-aligned, partial edge OK

    # Dual-TensorCore (v7x): if B == 1 and everything landed in one tile,
    # split the spatial axis so both cores get work.
    if B == 1 and t_hw == HW and HW >= 4 * _LANE:
        t_hw = _ceil_to(pl.cdiv(HW, 2), _LANE)

    # Batches per block: amortize the per-step cost for tiny (C, HW) slabs,
    # while keeping >= 2 parallel tiles when B >= 2.
    tb = 1
    if tc == C and t_hw == HW:
        per_b_in = max(1, C * HW * itemsize)
        per_b_out = max(1, sub * _ceil_to(HW, _LANE) * itemsize)
        tb = min(B,
                 max(1, _IN_BLOCK_BYTES // per_b_in),
                 max(1, _OUT_BLOCK_BYTES // per_b_out))
        if B >= 2:
            tb = min(tb, max(1, B // 2))

    grid_b = pl.cdiv(B, tb)
    grid_s = pl.cdiv(HW, t_hw)
    grid_k = pl.cdiv(C, tc)
    grid = (grid_b, grid_s, grid_k)

    in_spec = pl.BlockSpec((tb, tc, t_hw), lambda b, s, k: (b, k, s))
    out_spec = pl.BlockSpec((tb, 1, t_hw), lambda b, s, k: (b, 0, s))
    out_shape = jax.ShapeDtypeStruct((B, 1, HW), x.dtype)

    if grid_k == 1:
        kernel = functools.partial(_single_step_kernel, acc_dtype=acc_dtype)
        scratch = []
        acc_phys = 0
    else:
        kernel = functools.partial(_multi_step_kernel, acc_dtype=acc_dtype,
                                   tc=tc, c_total=C, mask_c=(C % tc != 0))
        scratch = [pltpu.VMEM((tb, 1, t_hw), acc_dtype)]
        acc_phys = tb * 8 * _ceil_to(t_hw, _LANE) * 4

    # VMEM budget: double-buffered in/out blocks (tile-padded) + scratch.
    in_phys = tb * _ceil_to(tc, sub) * _ceil_to(t_hw, _LANE) * itemsize
    out_phys = tb * sub * _ceil_to(t_hw, _LANE) * itemsize
    vmem_limit = 2 * in_phys + 2 * out_phys + acc_phys + (4 << 20)
    vmem_limit = int(min(max(vmem_limit, 16 << 20), 48 << 20))

    cost = pl.CostEstimate(
        flops=B * C * HW,
        transcendentals=0,
        bytes_accessed=B * C * HW * itemsize + B * HW * itemsize,
    )

    out = pl.pallas_call(
        kernel,
        out_shape=out_shape,
        grid_spec=pltpu.PrefetchScalarGridSpec(
            num_scalar_prefetch=0,
            grid=grid,
            in_specs=[in_spec],
            out_specs=out_spec,
            scratch_shapes=scratch,
        ),
        compiler_params=pltpu.CompilerParams(
            dimension_semantics=("parallel", "parallel", "arbitrary"),
            vmem_limit_bytes=vmem_limit,
        ),
        cost_estimate=cost,
    )(x3)

    return out.reshape((B,) + spatial)


if __name__ == "__main__":
    key = jax.random.PRNGKey(0)

    # Small NCHW input consistent with a typical conv feature map.
    x = jax.random.normal(key, (2, 4, 16, 16), dtype=jnp.float32)
    out = jax.block_until_ready(sum_dim1(x))
    ref = jnp.sum(x, axis=1)
    assert out.shape == ref.shape == (2, 16, 16)
    assert jnp.allclose(out, ref, atol=1e-5, rtol=1e-5)

    # Ragged (non-128-aligned) spatial extent — exercises the pad-free path.
    x2 = jax.random.normal(jax.random.PRNGKey(1), (2, 5, 7, 9), dtype=jnp.float32)
    out2 = jax.block_until_ready(sum_dim1(x2))
    ref2 = jnp.sum(x2, axis=1)
    assert out2.shape == ref2.shape == (2, 7, 9)
    assert jnp.allclose(out2, ref2, atol=1e-5, rtol=1e-5)

    print("KERNEL_OK")
</pallas_src>

<mosaic_0001>
module attributes {stable_mosaic.version = 11 : i64} {
  func.func @_single_step_kernel(%arg0: i32, %arg1: i32, %arg2: i32, %arg3: memref<1x4x256xf32, #tpu.memory_space<vmem>>, %arg4: memref<1x1x256xf32, #tpu.memory_space<vmem>>) attributes {dimension_semantics = [#tpu.dimension_semantics<parallel>, #tpu.dimension_semantics<parallel>, #tpu.dimension_semantics<arbitrary>], iteration_bounds = array<i64: 2, 1, 1>, scalar_prefetch = 0 : i64, scratch_operands = 0 : i64, tpu.core_type = #tpu.core_type<tc>, window_params = [{transform_indices = @transform_0, window_bounds = array<i64: 1, 4, 256>}, {transform_indices = @transform_1, window_bounds = array<i64: 1, 1, 256>}]} {
    %c0 = arith.constant 0 : index
    %c0_0 = arith.constant 0 : index
    %c0_1 = arith.constant 0 : index
    %0 = vector.load %arg3[%c0, %c0_0, %c0_1] : memref<1x4x256xf32, #tpu.memory_space<vmem>>, vector<1x4x256xf32>
    %cst = arith.constant dense<0.000000e+00> : vector<1x256xf32>
    %1 = vector.multi_reduction <add>, %0, %cst [1] : vector<1x4x256xf32> to vector<1x256xf32>
    %2 = vector.shape_cast %1 : vector<1x256xf32> to vector<1x1x256xf32>
    %c0_2 = arith.constant 0 : index
    %c0_3 = arith.constant 0 : index
    %c0_4 = arith.constant 0 : index
    %3 = vector.load %arg4[%c0_2, %c0_3, %c0_4] : memref<1x1x256xf32, #tpu.memory_space<vmem>>, vector<1x1x256xf32>
    tpu.vector_store %arg4[%c0_2, %c0_3, %c0_4], %2 {strides = array<i32>} : memref<1x1x256xf32, #tpu.memory_space<vmem>>, vector<1x1x256xf32>,
    return
  }
  func.func @transform_0(%arg0: i32, %arg1: i32, %arg2: i32) -> (i32, i32, i32) {
    %c0_i32 = arith.constant 0 : i32
    return %arg0, %arg2, %arg1 : i32, i32, i32
  }
  func.func @transform_1(%arg0: i32, %arg1: i32, %arg2: i32) -> (i32, i32, i32) {
    %c0_i32 = arith.constant 0 : i32
    %c0_i32_0 = arith.constant 0 : i32
    return %arg0, %c0_i32, %arg1 : i32, i32, i32
  }
}

</mosaic_0001>

<bundles_post_ra>
// kernel: tpu_custom_call.1
= control target key start
LH: loop header
LB: loop body
LE: loop exit
PB: predicated region body
PF: predicated region fallthrough
CT: control target
= control target key end

     0   :  { %6 = vsyncpa [#allocation3], 0  ;;  %s648_s0 = inlined_call_operand.hbm [shape: f32[2,4,256], index: 0, kind: input, shape index: {}]   ;;  %s649_s1 = inlined_call_operand.hbm [shape: f32[2,1,256], index: 1, kind: output, shape index: {}]  }
   0x1   :  { %8 = vsyncpa [#allocation3 + $0x1], 0 }
   0x2   :  { %9 = vsyncpa [#allocation4], 0 }
   0x3   :  { %11 = vsyncpa [#allocation4 + $0x1], 0  ;;  %s513_s6 = smov 0   ;;  %s515_s7 = smov 0  }
   0x4   :  { %s517_s8 = smov 0   ;;  %s519_s9 = smov 0  }
   0x5   :  { %s521_s10 = smov 0   ;;  %s523_s11 = smov 0  }
   0x6 LB: > { %s309_s12 = sadd.s32 4294967295, %s498_s11   ;;  %s310_s13 = sadd.s32 4294967294, %s498_s11   ;;  %s498_s11 = sphi %s523_s11, %s17_s11   ;;  %s494_s10 = sphi %s521_s10, %s661_s10   ;;  %s490_s9 = sphi %s519_s9, %s660_s9   ;;  %s486_s8 = sphi %s517_s8, %s659_s8   ;;  %s482_s7 = sphi %s515_s7, %s658_s7   ;;  %s478_s6 = sphi %s513_s6, %s657_s6  }
   0x7   : > { %s36_s14 = sadd.s32 1, %s494_s10  ;;  %s47_s15 = sadd.s32 1, %s486_s8 }
   0x8   : > { %p38_p0 = scmp.ge.s32.totalorder %s36_s14, 2  ;;  %p54_p1 = scmp.ne.s32.totalorder %s486_s8, %s482_s7 }
   0x9   : > { %p55_p2 = scmp.eq.s32.totalorder %s498_s11, 0  ;;  %p60_p3 = scmp.ne.s32.totalorder %s482_s7, %s478_s6 }
   0xa   : > { %s663_s14 = smov (%p38_p0, %s36_s14), 0  ;;  %p61_p5 = scmp.eq.s32.totalorder %s309_s12, 0 }
   0xb   : > { %p554_p4 = por %p55_p2, %p54_p1  ;;  %s40_s17 = ssub.s32 %s494_s10, %s663_s14 }
   0xc   : > { %p86_p6 = scmp.eq.s32.totalorder %s309_s12, 1  ;;  %p45_p7 = scmp.eq.s32.totalorder %s40_s17, 0 }
   0xd   : > { %p560_p8 = por %p61_p5, %p60_p3  ;;  %p92_p10 = scmp.eq.s32.totalorder %s310_s13, 1 }
   0xe   : > { %p564_p9 = por %p86_p6, %p54_p1  ;;  %p338_p13 = scmp.lt.s32.totalorder %s498_s11, 2 }
   0xf   : > { %s569_s20 = scalar_select %p45_p7, %s486_s8, %s47_s15  }
  0x10   : > { %p571_p11 = por %p92_p10, %p60_p3  ;;  %s112_s22 = sand.u32 1, %s486_s8  }
  0x11   : > { %s313_s23 = sshll.u32 %s112_s22, 3  ;;  %s324_s24 = sshll.u32 %s494_s10, 7 }
  0x12   : > { %s653_s21 = scalar_select %p571_p11, 1, 0 }
  0x13   : > { %s126_s27 = scalar_lea.hbm %s648_s0, %s324_s24  ;;  %s116_s28 = scalar_lea.vmem [#allocation2], %s313_s23 }
  0x14   : > { %s128_s29 = sshll.u32 %s116_s28, 4  ;;  %p584_p0 = pnand %p338_p13, %p554_p4  ;;  %s129_s29 = int_to_ptr.vmem [resolvable:$true] %s128_s29 }
  0x15   : > { %p316_p1 = scmp.ge.s32.totalorder %s498_s11, 1  ;;  %p133_p2 = scmp.lt.s32.totalorder %s498_s11, 3 }
  0x16   : > { %s113_s2 = scalar_lea.sflag [#allocation3], %s112_s22  ;;  %p392_p3 = pneg %p584_p0 }
  0x17   : > { %s403_s3 = scalar_lea.vmem %s129_s29, 128  ;;  %s500_s4 = smov [#allocation2]  }
  0x18   : > { %p404_p5 = scmp.ne.s32.totalorder %s129_s29, %s403_s3  ;;  %s408_s5 = sshll.u32 %s500_s4, 4  ;;  %s409_s5 = int_to_ptr.vmem [resolvable:$false] %s408_s5 }
  0x19   : > { %s410_s12 = scalar_lea.vmem %s409_s5, 256  ;;  %p411_p10 = scmp.lt.s32.totalorder %s129_s29, %s409_s5 }
  0x1a   : > { %p406_p6 = pnand %p404_p5, %p392_p3  ;;  %p412_p12 = scmp.lt.s32.totalorder %s410_s12, %s403_s3 }
  0x1c   : > { %p407_p7 = pneg %p406_p6  ;;  %p413_p4 = por %p412_p12, %p411_p10 }
  0x1e   : > { %p414_p13 = pnand %p413_p4, %p407_p7 }
  0x20   : > { %417 = shalt.err (!%p414_p13)
}
  0x21   : > { %333 = dma.hbm_to_vmem [thread:$0]  (!%p584_p0), %s126_s27, 128, %s129_s29, %s113_s2  }
  0x22   : > { %p134_p11 = pnand %p316_p1, %p133_p2 }
  0x23   : > { %s599_s13 = sand.u32 (!%p134_p11), 1, %s482_s7  }
  0x24   : > { %137 = sbr.rel (%p134_p11) target bundleno = 77 (0x4d), region = 24  ;;  %s317_s15 = sshll.u32 (!%p134_p11), %s599_s13, 3 }
  0x25   : > { %s140_s16 = scalar_lea.sflag (!%p134_p11), [#allocation3], %s599_s13  ;;  %s143_s17 = scalar_lea.vmem (!%p134_p11), [#allocation2], %s317_s15 }
  0x29   : > { %469 = dma.done.wait (%p560_p8), %s140_s16, 128  }
  0x2a   : > { %471 = vsyncadd (%p560_p8), %s140_s16, 4294967168  ;;  %vm168_vm0 = vcmask 1043456   ;;  %v164_v0 = vld [vmem:[%s143_s17] sm:$0xff]  ;;  %v501_v9 = vmov 1966171168   ;;  %v189_v11 = vlaneseq  ;;  %s318_s18 = sshll.u32 %s599_s13, 1 }
  0x2b   : > { %v166_v1 = vcombine.high %v164_v0, %v164_v0  ;;  %v169_v2 = vsel %vm168_vm0, %v164_v0, 0.0  ;;  %v187_v10 = vunpack.c.l.s4 %v501_v9  ;;  %s161_s22 = scalar_lea.vmem [#allocation5], %s318_s18  ;;  %s325_s24 = sshll.u32 %s490_s9, 5 }
  0x2c   : > { %v170_v3 = vrot.slane %v169_v2, 4  ;;  %v190_v17 = vshrl.u32 %v189_v11, 7  ;;  %s223_s23 = sshll.u32 %s161_s22, 4  ;;  %vm203_vm1 = vcmp.lt.s32.totalorder %v189_v11, 256  ;;  %s221_s27 = scalar_lea.hbm %s649_s1, %s325_s24  ;;  %s224_s23 = int_to_ptr.vmem [resolvable:$true] %s223_s23 }
  0x2d   : > { %v176_v4 = vsel %vm168_vm0, %v166_v1, 0.0  ;;  %v188_v16 = vunpack.c.0.s8 %v187_v10  ;;  %s207_s28 = scalar_lea.sflag [#allocation4], %s599_s13  ;;  %s418_s29 = scalar_lea.vmem %s224_s23, 32 }
  0x2e   : > { %v171_v5 = vadd.f32 %v170_v3, %v169_v2  ;;  %v177_v6 = vrot.slane %v176_v4, 4  ;;  %p419_p8 = scmp.ne.s32.totalorder %s224_s23, %s418_s29  ;;  %s502_s30 = smov [#allocation5]  }
  0x2f   : > { %v191_v21 = vsub.s32 %v188_v16, %v190_v17  ;;  %s422_s2 = sshll.u32 %s502_s30, 4  ;;  %s423_s2 = int_to_ptr.vmem [resolvable:$false] %s422_s2 }
  0x30   : > { %v172_v7 = vrot.slane %v171_v5, 2  ;;  %v178_v8 = vadd.f32 %v177_v6, %v176_v4  ;;  %p420_p11 = pnand %p419_p8, %p564_p9  ;;  %s424_s3 = scalar_lea.vmem %s423_s2, 64 }
  0x31   : > { %p425_p0 = scmp.lt.s32.totalorder %s224_s23, %s423_s2  ;;  %p426_p1 = scmp.lt.s32.totalorder %s424_s3, %s418_s29 }
  0x32   : > { %v173_v12 = vadd.f32 %v172_v7, %v171_v5  ;;  %v179_v13 = vrot.slane %v178_v8, 2  ;;  %p421_p12 = pneg %p420_p11 }
  0x33   : > { %p427_p2 = por %p426_p1, %p425_p0 }
  0x34   : > { %v174_v14 = vrot.slane %v173_v12, 1  ;;  %v180_v15 = vadd.f32 %v179_v13, %v178_v8 }
  0x35   : > { %p428_p3 = pnand %p427_p2, %p421_p12 }
  0x36   : > { %v175_v18 = vadd.f32 %v174_v14, %v173_v12  ;;  %v181_v19 = vrot.slane %v180_v15, 1 }
  0x38   : > { %v182_v20 = vadd.f32 %v181_v19, %v180_v15 }
  0x3a   : > { %v185_v22 = vcombine.low %v175_v18, %v182_v20 }
  0x3c   : > { %v192_v23 = vrot.slane %v185_v22, %v191_v21 }
  0x3e   : > { %v199_v24 = vrot.slane %v192_v23, %v191_v21 }
  0x40   : > { %205 = vst.msk [vmem:[%s161_s22] sm:$0x3] %vm203_vm1, %v199_v24 }
  0x41   : > { %431 = shalt.err (!%p428_p3)
}
  0x42   : > { %s432_s9 = scalar_lea.hbm %s221_s27, 32  ;;  %s436_s12 = scalar_lea.hbm %s649_s1, 64 }
  0x43   : > { %p433_p5 = scmp.ne.s32.totalorder %s221_s27, %s432_s9  ;;  %p437_p10 = scmp.lt.s32.totalorder %s221_s27, %s649_s1 }
  0x44   : > { %p438_p4 = scmp.lt.s32.totalorder %s436_s12, %s432_s9 }
  0x45   : > { %p434_p6 = pnand %p433_p5, %p564_p9 }
  0x46   : > { %p439_p13 = por %p438_p4, %p437_p10 }
  0x47   : > { %p435_p7 = pneg %p434_p6 }
  0x49   : > { %p440_p8 = pnand %p439_p13, %p435_p7 }
  0x4b   : > { %443 = shalt.err (!%p440_p8)
}
  0x4c   : > { %328 = dma.vmem_to_hbm [thread:$0]  (%p564_p9), %s224_s23, 32, %s221_s27, %s207_s28  }
  0x4d PF: > { %s235_s16 = sand.u32 1, %s478_s6   ;;  %p655_p11 = scmp.ne.s32.totalorder %s653_s21, 0 }
  0x4e   : > { %p656_p12 = scmp.ge.s32.totalorder %s498_s11, 2  ;;  %s236_s17 = scalar_lea.sflag [#allocation4], %s235_s16 }
  0x50   : > { %p335_p0 = pnand %p656_p12, %p655_p11 }
  0x52   : > { %p336_p1 = pneg %p335_p0 }
  0x54   : > { %473 = dma.done.wait (%p336_p1), %s236_s17, 32  }
  0x55   : > { %475 = vsyncadd (%p336_p1), %s236_s17, 4294967264  ;;  %s17_s11 = sadd.s32 1, %s498_s11   ;;  %s657_s6 = smov %s482_s7 }
  0x56   : > { %p14_p2 = scmp.ge.s32.totalorder %s17_s11, 4   ;;  %s658_s7 = smov %s486_s8 }
  0x57   : > { %s659_s8 = smov %s569_s20  ;;  %s660_s9 = smov %s494_s10 }
  0x58   : > { %s661_s10 = smov %s663_s14  ;;  %16 = sbr.rel (!%p14_p2) target bundleno = 6 (0x6), region = 69 }
  0x5d   :  { %241 = vsyncpa [#allocation3], 1 }
  0x5e   :  { %243 = vsyncpa [#allocation3 + $0x1], 1 }
  0x5f   :  { %244 = vsyncpa [#allocation4], 1 }
  0x60   :  { %246 = vsyncpa [#allocation4 + $0x1], 1 }

</bundles_post_ra>
